<compile_context>
chip_gen: v7x
topology: tpu7x:2x2x1
jax: 0.10.0
libtpu: 0.0.40
codegen_flags: <defaults>
</compile_context>

<pallas_src>
import functools

import numpy as np
import jax
import jax.numpy as jnp
from jax.experimental import pallas as pl
from jax.experimental.pallas import tpu as pltpu


def _pick_batch_tile(B):
    """All batch elements in one step when B is small; otherwise a small divisor."""
    if B <= 8:
        return B
    for bt in (8, 4, 2):
        if B % bt == 0:
            return bt
    return 1


# ----------------------------------------------------------------------------
# Fused GraphPool kernel: projection + sigmoid + rank-based top-k + MXU gather.
# ----------------------------------------------------------------------------
@functools.lru_cache(maxsize=None)
def _build_graph_pool(B, N, D, n_keep):
    Bt = _pick_batch_tile(B)

    def kernel(h_ref, w_ref, b_ref, o_ref):
        w = w_ref[...]                                   # (1, D) resident weight row
        bias = b_ref[0]                                  # scalar from SMEM

        # Index bookkeeping shared across batch elements (int32, exact).
        j_iota = jax.lax.broadcasted_iota(jnp.int32, (N, N), 0)       # j along sublanes
        i_iota = jax.lax.broadcasted_iota(jnp.int32, (N, N), 1)       # i along lanes
        eye = j_iota == i_iota
        lower = j_iota < i_iota                                        # j < i
        r_iota = jax.lax.broadcasted_iota(jnp.int32, (n_keep, N), 0)   # rank slot r

        for b in range(Bt):                              # small static unroll over batch
            x = h_ref[b]                                 # (N, D) nodes for this element
            # score_i = sigmoid(<x_i, w> + bias) -> (N, 1); VPU mul + lane reduce.
            z = jnp.sum(x * w, axis=1, keepdims=True) + bias
            s_col = 1.0 / (1.0 + jnp.exp(-z))            # (N, 1)
            hs = x * s_col                               # (N, D) score-weighted nodes

            # Row-layout copy of the scores (1, N) via a masked sublane reduce
            # (avoids an explicit (N,1)->(1,N) transpose/relayout).
            s_mat = jnp.broadcast_to(s_col, (N, N))      # [j, i] = s_j
            s_row = jnp.sum(jnp.where(eye, s_mat, 0.0),
                            axis=0, keepdims=True)       # (1, N), [i] = s_i

            # rank_i = #{j: s_j > s_i} + #{j < i: s_j == s_i}
            # (torch.topk descending order, smallest index wins ties).
            gt = (s_mat > s_row).astype(jnp.int32)                    # [j,i] = s_j > s_i
            eq_lt = ((s_mat == s_row) & lower).astype(jnp.int32)
            rank = jnp.sum(gt + eq_lt, axis=0, keepdims=True)         # (1, N) int32

            # One-hot selection matrix (n_keep, N): row r picks the node of rank r.
            sel = (rank == r_iota).astype(jnp.float32)

            # Gather in selection order as a single MXU matmul: (n_keep,N)@(N,D).
            o_ref[b] = jnp.dot(sel, hs, preferred_element_type=jnp.float32)

    grid = (B // Bt,)
    return pl.pallas_call(
        kernel,
        out_shape=jax.ShapeDtypeStruct((B, n_keep, D), jnp.float32),
        grid=grid,
        in_specs=[
            pl.BlockSpec((Bt, N, D), lambda i: (i, 0, 0)),              # h
            pl.BlockSpec((1, D), lambda i: (0, 0)),                     # proj weight
            pl.BlockSpec(memory_space=pltpu.MemorySpace.SMEM),          # proj bias (scalar)
        ],
        out_specs=pl.BlockSpec((Bt, n_keep, D), lambda i: (i, 0, 0)),
        compiler_params=pltpu.CompilerParams(
            dimension_semantics=("parallel",)),          # batch-tile axis (size 1 for B=2)
    )


def graph_pool(h, proj_w, proj_b, k):
    """GraphPool forward (eval mode).

    h:       (B, N, D) float
    proj_w:  (1, D)    nn.Linear(in_dim, 1).weight layout
    proj_b:  (1,)      nn.Linear(in_dim, 1).bias
    k:       float keep ratio
    returns: (B, max(int(N*k), 2), D) float32
    """
    B, N, D = h.shape
    n_keep = max(int(N * k), 2)
    assert 2 <= n_keep <= N, (n_keep, N)
    call = _build_graph_pool(B, N, D, n_keep)
    return call(h.astype(jnp.float32),
                jnp.reshape(proj_w, (1, D)).astype(jnp.float32),
                jnp.reshape(proj_b, (1,)).astype(jnp.float32))


# ----------------------------------------------------------------------------
# Pure-JAX reference (mirrors the PyTorch module) for a correctness check.
# ----------------------------------------------------------------------------
def graph_pool_ref(h, proj_w, proj_b, k):
    B, N, D = h.shape
    n_keep = max(int(N * k), 2)
    scores = jax.nn.sigmoid(jnp.einsum('bnd,d->bn', h, proj_w.reshape(-1)) + proj_b[0])
    _, idx = jax.lax.top_k(scores, n_keep)                  # descending, like torch.topk
    hs = h * scores[..., None]
    idx_b = jnp.broadcast_to(idx[:, :, None], (B, n_keep, D))
    return jnp.take_along_axis(hs, idx_b, axis=1)


if __name__ == "__main__":
    key = jax.random.PRNGKey(0)
    kh, kw, kb = jax.random.split(key, 3)

    # Small shapes consistent with the model's temporal GraphPool: 29 nodes, dim 32, k=0.64.
    B, N, D = 2, 29, 32
    k_ratio = 0.64
    n_keep = max(int(N * k_ratio), 2)

    h = jax.random.normal(kh, (B, N, D), dtype=jnp.float32)
    proj_w = jax.random.normal(kw, (1, D), dtype=jnp.float32) / np.sqrt(D)
    proj_b = jax.random.normal(kb, (1,), dtype=jnp.float32) * 0.1

    fwd = jax.jit(functools.partial(graph_pool, k=k_ratio))
    out = fwd(h, proj_w, proj_b)
    jax.block_until_ready(out)

    assert out.shape == (B, n_keep, D), out.shape
    ref = graph_pool_ref(h, proj_w, proj_b, k_ratio)
    # rtol covers possible bf16-pass MXU rounding of the f32 one-hot gather matmul on
    # some generations; any selection/ordering/projection bug would show as O(1) errors.
    np.testing.assert_allclose(np.asarray(out), np.asarray(ref), rtol=3e-3, atol=1e-5)

    print("KERNEL_OK")
</pallas_src>

<mosaic_0001>
module attributes {stable_mosaic.version = 11 : i64} {
  func.func @kernel(%arg0: i32, %arg1: memref<2x29x32xf32, #tpu.memory_space<vmem>>, %arg2: memref<1x32xf32, #tpu.memory_space<vmem>>, %arg3: memref<1xf32, #tpu.memory_space<smem>>, %arg4: memref<2x18x32xf32, #tpu.memory_space<vmem>>) attributes {dimension_semantics = [#tpu.dimension_semantics<parallel>], iteration_bounds = array<i64: 1>, scalar_prefetch = 0 : i64, scratch_operands = 0 : i64, tpu.core_type = #tpu.core_type<tc>, window_params = [{transform_indices = @transform_0, window_bounds = array<i64: 2, 29, 32>}, {pipeline_mode = #tpu.pipeline_mode<synchronous>, transform_indices = @transform_1, window_bounds = array<i64: 1, 32>}, {transform_indices = @transform_2, window_bounds = array<i64: 1>}, {transform_indices = @transform_3, window_bounds = array<i64: 2, 18, 32>}]} {
    %c0 = arith.constant 0 : index
    %c0_0 = arith.constant 0 : index
    %0 = vector.load %arg2[%c0, %c0_0] : memref<1x32xf32, #tpu.memory_space<vmem>>, vector<1x32xf32>
    %c0_1 = arith.constant 0 : index
    %1 = memref.load %arg3[%c0_1] : memref<1xf32, #tpu.memory_space<smem>>
    %2 = tpu.iota {dimensions = array<i32: 0>} : vector<29x29xi32>
    %3 = tpu.iota {dimensions = array<i32: 1>} : vector<29x29xi32>
    %4 = arith.cmpi eq, %2, %3 : vector<29x29xi32>
    %5 = arith.cmpi slt, %2, %3 : vector<29x29xi32>
    %6 = tpu.iota {dimensions = array<i32: 0>} : vector<18x29xi32>
    %c0_2 = arith.constant 0 : index
    %c0_3 = arith.constant 0 : index
    %c0_4 = arith.constant 0 : index
    %7 = vector.load %arg1[%c0_2, %c0_3, %c0_4] : memref<2x29x32xf32, #tpu.memory_space<vmem>>, vector<1x29x32xf32>
    %8 = vector.shape_cast %7 : vector<1x29x32xf32> to vector<29x32xf32>
    %9 = vector.broadcast %0 : vector<1x32xf32> to vector<29x32xf32>
    %10 = arith.mulf %8, %9 : vector<29x32xf32>
    %cst = arith.constant dense<0.000000e+00> : vector<29xf32>
    %11 = vector.multi_reduction <add>, %10, %cst [1] : vector<29x32xf32> to vector<29xf32>
    %12 = vector.shape_cast %11 : vector<29xf32> to vector<29x1xf32>
    %13 = vector.broadcast %1 : f32 to vector<29x1xf32>
    %14 = arith.addf %12, %13 : vector<29x1xf32>
    %cst_5 = arith.constant 0.000000e+00 : f32
    %15 = vector.broadcast %cst_5 : f32 to vector<29x1xf32>
    %16 = arith.subf %15, %14 : vector<29x1xf32>
    %17 = math.exp %16 : vector<29x1xf32>
    %cst_6 = arith.constant 1.000000e+00 : f32
    %18 = vector.broadcast %cst_6 : f32 to vector<29x1xf32>
    %19 = arith.addf %18, %17 : vector<29x1xf32>
    %cst_7 = arith.constant 1.000000e+00 : f32
    %20 = vector.broadcast %cst_7 : f32 to vector<29x1xf32>
    %21 = arith.divf %20, %19 : vector<29x1xf32>
    %22 = vector.broadcast %21 : vector<29x1xf32> to vector<29x32xf32>
    %23 = arith.mulf %8, %22 : vector<29x32xf32>
    %24 = vector.shape_cast %21 : vector<29x1xf32> to vector<29x1xf32>
    %25 = vector.broadcast %24 : vector<29x1xf32> to vector<29x29xf32>
    %cst_8 = arith.constant 0.000000e+00 : f32
    %26 = vector.broadcast %cst_8 : f32 to vector<29x29xf32>
    %27 = arith.select %4, %25, %26 : vector<29x29xi1>, vector<29x29xf32>
    %cst_9 = arith.constant dense<0.000000e+00> : vector<29xf32>
    %28 = vector.multi_reduction <add>, %27, %cst_9 [0] : vector<29x29xf32> to vector<29xf32>
    %29 = vector.shape_cast %28 : vector<29xf32> to vector<1x29xf32>
    %30 = vector.broadcast %29 : vector<1x29xf32> to vector<29x29xf32>
    %31 = arith.cmpf ogt, %25, %30 : vector<29x29xf32>
    %32 = arith.extui %31 : vector<29x29xi1> to vector<29x29xi32>
    %33 = vector.broadcast %29 : vector<1x29xf32> to vector<29x29xf32>
    %34 = arith.cmpf oeq, %25, %33 : vector<29x29xf32>
    %35 = arith.andi %34, %5 : vector<29x29xi1>
    %36 = arith.extui %35 : vector<29x29xi1> to vector<29x29xi32>
    %37 = arith.addi %32, %36 : vector<29x29xi32>
    %cst_10 = arith.constant dense<0> : vector<29xi32>
    %38 = vector.multi_reduction <add>, %37, %cst_10 [0] : vector<29x29xi32> to vector<29xi32>
    %39 = vector.shape_cast %38 : vector<29xi32> to vector<1x29xi32>
    %40 = vector.broadcast %39 : vector<1x29xi32> to vector<18x29xi32>
    %41 = arith.cmpi eq, %40, %6 : vector<18x29xi32>
    %42 = arith.extui %41 : vector<18x29xi1> to vector<18x29xi32>
    %43 = arith.sitofp %42 : vector<18x29xi32> to vector<18x29xf32>
    %cst_11 = arith.constant dense<0.000000e+00> : vector<18x32xf32>
    %44 = tpu.matmul %43, %23, %cst_11 {dimension_numbers = #tpu.dot_dimension_numbers<[1], [0], [0], [1], [0, 0, 1, 1], [], []>} : vector<18x29xf32>, vector<29x32xf32>, vector<18x32xf32> -> vector<18x32xf32>
    %c0_12 = arith.constant 0 : index
    %c0_13 = arith.constant 0 : index
    %c0_14 = arith.constant 0 : index
    %45 = vector.load %arg4[%c0_12, %c0_13, %c0_14] : memref<2x18x32xf32, #tpu.memory_space<vmem>>, vector<1x18x32xf32>
    %46 = vector.shape_cast %45 : vector<1x18x32xf32> to vector<18x32xf32>
    %47 = vector.shape_cast %44 : vector<18x32xf32> to vector<1x18x32xf32>
    tpu.vector_store %arg4[%c0_12, %c0_13, %c0_14], %47 {strides = array<i32>} : memref<2x18x32xf32, #tpu.memory_space<vmem>>, vector<1x18x32xf32>,
    %c1 = arith.constant 1 : index
    %c0_15 = arith.constant 0 : index
    %c0_16 = arith.constant 0 : index
    %48 = vector.load %arg1[%c1, %c0_15, %c0_16] : memref<2x29x32xf32, #tpu.memory_space<vmem>>, vector<1x29x32xf32>
    %49 = vector.shape_cast %48 : vector<1x29x32xf32> to vector<29x32xf32>
    %50 = vector.broadcast %0 : vector<1x32xf32> to vector<29x32xf32>
    %51 = arith.mulf %49, %50 : vector<29x32xf32>
    %cst_17 = arith.constant dense<0.000000e+00> : vector<29xf32>
    %52 = vector.multi_reduction <add>, %51, %cst_17 [1] : vector<29x32xf32> to vector<29xf32>
    %53 = vector.shape_cast %52 : vector<29xf32> to vector<29x1xf32>
    %54 = vector.broadcast %1 : f32 to vector<29x1xf32>
    %55 = arith.addf %53, %54 : vector<29x1xf32>
    %cst_18 = arith.constant 0.000000e+00 : f32
    %56 = vector.broadcast %cst_18 : f32 to vector<29x1xf32>
    %57 = arith.subf %56, %55 : vector<29x1xf32>
    %58 = math.exp %57 : vector<29x1xf32>
    %cst_19 = arith.constant 1.000000e+00 : f32
    %59 = vector.broadcast %cst_19 : f32 to vector<29x1xf32>
    %60 = arith.addf %59, %58 : vector<29x1xf32>
    %cst_20 = arith.constant 1.000000e+00 : f32
    %61 = vector.broadcast %cst_20 : f32 to vector<29x1xf32>
    %62 = arith.divf %61, %60 : vector<29x1xf32>
    %63 = vector.broadcast %62 : vector<29x1xf32> to vector<29x32xf32>
    %64 = arith.mulf %49, %63 : vector<29x32xf32>
    %65 = vector.shape_cast %62 : vector<29x1xf32> to vector<29x1xf32>
    %66 = vector.broadcast %65 : vector<29x1xf32> to vector<29x29xf32>
    %cst_21 = arith.constant 0.000000e+00 : f32
    %67 = vector.broadcast %cst_21 : f32 to vector<29x29xf32>
    %68 = arith.select %4, %66, %67 : vector<29x29xi1>, vector<29x29xf32>
    %cst_22 = arith.constant dense<0.000000e+00> : vector<29xf32>
    %69 = vector.multi_reduction <add>, %68, %cst_22 [0] : vector<29x29xf32> to vector<29xf32>
    %70 = vector.shape_cast %69 : vector<29xf32> to vector<1x29xf32>
    %71 = vector.broadcast %70 : vector<1x29xf32> to vector<29x29xf32>
    %72 = arith.cmpf ogt, %66, %71 : vector<29x29xf32>
    %73 = arith.extui %72 : vector<29x29xi1> to vector<29x29xi32>
    %74 = vector.broadcast %70 : vector<1x29xf32> to vector<29x29xf32>
    %75 = arith.cmpf oeq, %66, %74 : vector<29x29xf32>
    %76 = arith.andi %75, %5 : vector<29x29xi1>
    %77 = arith.extui %76 : vector<29x29xi1> to vector<29x29xi32>
    %78 = arith.addi %73, %77 : vector<29x29xi32>
    %cst_23 = arith.constant dense<0> : vector<29xi32>
    %79 = vector.multi_reduction <add>, %78, %cst_23 [0] : vector<29x29xi32> to vector<29xi32>
    %80 = vector.shape_cast %79 : vector<29xi32> to vector<1x29xi32>
    %81 = vector.broadcast %80 : vector<1x29xi32> to vector<18x29xi32>
    %82 = arith.cmpi eq, %81, %6 : vector<18x29xi32>
    %83 = arith.extui %82 : vector<18x29xi1> to vector<18x29xi32>
    %84 = arith.sitofp %83 : vector<18x29xi32> to vector<18x29xf32>
    %cst_24 = arith.constant dense<0.000000e+00> : vector<18x32xf32>
    %85 = tpu.matmul %84, %64, %cst_24 {dimension_numbers = #tpu.dot_dimension_numbers<[1], [0], [0], [1], [0, 0, 1, 1], [], []>} : vector<18x29xf32>, vector<29x32xf32>, vector<18x32xf32> -> vector<18x32xf32>
    %c1_25 = arith.constant 1 : index
    %c0_26 = arith.constant 0 : index
    %c0_27 = arith.constant 0 : index
    %86 = vector.load %arg4[%c1_25, %c0_26, %c0_27] : memref<2x18x32xf32, #tpu.memory_space<vmem>>, vector<1x18x32xf32>
    %87 = vector.shape_cast %86 : vector<1x18x32xf32> to vector<18x32xf32>
    %88 = vector.shape_cast %85 : vector<18x32xf32> to vector<1x18x32xf32>
    tpu.vector_store %arg4[%c1_25, %c0_26, %c0_27], %88 {strides = array<i32>} : memref<2x18x32xf32, #tpu.memory_space<vmem>>, vector<1x18x32xf32>,
    return
  }
  func.func @transform_0(%arg0: i32) -> (i32, i32, i32) {
    %c0_i32 = arith.constant 0 : i32
    %c0_i32_0 = arith.constant 0 : i32
    %c0_i32_1 = arith.constant 0 : i32
    return %arg0, %c0_i32, %c0_i32_0 : i32, i32, i32
  }
  func.func @transform_1(%arg0: i32) -> (i32, i32) {
    %c0_i32 = arith.constant 0 : i32
    %c0_i32_0 = arith.constant 0 : i32
    %c0_i32_1 = arith.constant 0 : i32
    return %c0_i32, %c0_i32_0 : i32, i32
  }
  func.func @transform_2(%arg0: i32) -> i32 {
    %c0_i32 = arith.constant 0 : i32
    %c0_i32_0 = arith.constant 0 : i32
    return %c0_i32 : i32
  }
  func.func @transform_3(%arg0: i32) -> (i32, i32, i32) {
    %c0_i32 = arith.constant 0 : i32
    %c0_i32_0 = arith.constant 0 : i32
    %c0_i32_1 = arith.constant 0 : i32
    return %arg0, %c0_i32, %c0_i32_0 : i32, i32, i32
  }
}

</mosaic_0001>

<bundles_post_ra>
// kernel: graph_pool.1
= control target key start
LH: loop header
LB: loop body
LE: loop exit
PB: predicated region body
PF: predicated region fallthrough
CT: control target
= control target key end

     0   :  { %vm905_vm0 = vcmask 261120   ;;  %vm56_vm1 = vcmask 258048   ;;  %v592_v25 = vmov 0.0|0.0   ;;  %vm906_vm2 = vmmov 0   ;;  %s901_s0 = inlined_call_operand.vmem [shape: f32[2,29,32], index: 0, kind: input, shape index: {}]   ;;  %s902_s1 = inlined_call_operand.vmem [shape: f32[1,32], index: 1, kind: input, shape index: {}]   ;;  %s903_s2 = inlined_call_operand.<no memory space> [shape: f32[1], index: 2, kind: input, shape index: {}]   ;;  %s904_s3 = inlined_call_operand.vmem [shape: f32[2,18,32], index: 3, kind: output, shape index: {}]  }
   0x1   :  { %v471_v0 = vld [vmem:[%s902_s1] ss:$0 sm:$0xff]  ;;  %v635_v5 = vld [vmem:[%s901_s0 + $0x28] sm:$0xff]  ;;  %v647_v9 = vld [vmem:[%s901_s0 + $0x30] sm:$0xff]  ;;  %541 = vmatprep.subr.bf16.mxu0 %v592_v25  ;;  %548 = vmatprep.subr.bf16.mxu1 %v592_v25  ;;  %v594_v26 = vmov 0.0   ;;  %v60_v27 = vstv %s903_s2  ;;  %vm909_vm6 = vcmask 236544  }
   0x2   :  { %v623_v1 = vld [vmem:[%s901_s0 + $0x20] sm:$0xff]  ;;  %v640_v6 = vld [vmem:[%s901_s0 + $0x8] sm:$0xff]  ;;  %v261_v7 = vmul.f32 %v635_v5, %v471_v0  ;;  %v652_v10 = vld [vmem:[%s901_s0 + $0x10] sm:$0xff]  ;;  %v262_v15 = vmul.f32 %v647_v9, %v471_v0  ;;  %515 = vmatprep.mubr.msk.f32.mxu0 %vm906_vm2, %v594_v26  ;;  %532 = vmatprep.mubr.msk.f32.mxu1 %vm906_vm2, %v594_v26  ;;  %vm167_vm8 = vcmask 1044480   ;;  %vm908_vm9 = vcmask 233472  }
   0x3   :  { %v628_v2 = vld [vmem:[%s901_s0] sm:$0xff]  ;;  %v260_v3 = vmul.f32 %v623_v1, %v471_v0  ;;  %v43_v8 = vmul.f32 %v471_v0, %v640_v6  ;;  %v44_v16 = vmul.f32 %v471_v0, %v652_v10  ;;  %v663_v17 = vld [vmem:[%s901_s0 + $0x38] sm:$0x1f]  ;;  %vm595_vm10 = vmmov 1  }
   0x4   :  { %v42_v4 = vmul.f32 %v471_v0, %v628_v2  ;;  %v267_v13 = vsel %vm905_vm0, %v261_v7, 0.0  ;;  %v668_v18 = vld [vmem:[%s901_s0 + $0x18] sm:$0x1f]  ;;  %v270_v19 = vsel %vm905_vm0, %v262_v15, 0.0  ;;  %v263_v21 = vmul.f32 %v663_v17, %v471_v0  ;;  %vm767_vm11 = vmpackc.low %vm167_vm8, %vm595_vm10 }
   0x5   :  { %v264_v11 = vsel %vm905_vm0, %v260_v3, 0.0  ;;  %v50_v14 = vsel %vm905_vm0, %v43_v8, 0.0  ;;  %v53_v20 = vsel %vm905_vm0, %v44_v16, 0.0  ;;  %v45_v22 = vmul.f32 %v471_v0, %v668_v18 }
   0x6   :  { %v47_v12 = vsel %vm905_vm0, %v42_v4, 0.0  ;;  %265 = vadd.xlane.f32.xlu1 %v264_v11  ;;  %v273_v23 = vsel %vm56_vm1, %v263_v21, 0.0  ;;  %v17_v7 = vlaneseq }
   0x7   :  { %48 = vadd.xlane.f32.xlu0 %v47_v12  ;;  %v57_v24 = vsel %vm56_vm1, %v45_v22, 0.0 }
   0x8   :  { %v688_v21 = vand.u32 127, %v17_v7 }
   0xa   :  { %268 = vadd.xlane.f32.xlu1 %v267_v13 }
   0xb   :  { %51 = vadd.xlane.f32.xlu0 %v50_v14  ;;  %v683_v14 = vshrl.u32 %v17_v7, 7 }
   0xd   :  { %v686_v16 = vadd.s32 8, %v683_v14  ;;  %vm24_vm4 = vcmp.eq.s32.totalorder %v683_v14, %v688_v21  ;;  %vm28_vm12 = vcmp.lt.s32.totalorder %v683_v14, %v688_v21 }
   0xe   :  { %271 = vadd.xlane.f32.xlu1 %v270_v19 }
   0xf   :  { %54 = vadd.xlane.f32.xlu0 %v53_v20  ;;  %vm25_vm3 = vcmp.eq.s32.totalorder %v686_v16, %v688_v21  ;;  %vm29_vm13 = vcmp.lt.s32.totalorder %v686_v16, %v688_v21 }
  0x12   :  { %274 = vadd.xlane.f32.xlu1 %v273_v23 }
  0x13   :  { %58 = vadd.xlane.f32.xlu0 %v57_v24  ;;  %v693_v24 = vadd.s32 16, %v683_v14 }
  0x15   :  { %vm26_vm5 = vcmp.eq.s32.totalorder %v693_v24, %v688_v21  ;;  %vm30_vm14 = vcmp.lt.s32.totalorder %v693_v24, %v688_v21 }
  0x93   :  { %v266_v28 = vpop.xlane.xlu1 %265 }
  0x94   :  { %v49_v29 = vpop.xlane.xlu0 %48  ;;  %v276_v30 = vadd.f32 %v266_v28, %v60_v27 }
  0x95   :  { %v61_v31 = vadd.f32 %v60_v27, %v49_v29 }
  0x96   :  { %v280_v32 = vsub.f32 0.0, %v276_v30  ;;  %v702_v30 = vadd.s32 24, %v683_v14 }
  0x97   :  { %v65_v33 = vsub.f32 0.0, %v61_v31  ;;  %v269_v34 = vpop.xlane.xlu1 %268 }
  0x98   :  { %v52_v35 = vpop.xlane.xlu0 %51  ;;  %v284_v36 = vmul.f32 1.442695, %v280_v32  ;;  %v277_v38 = vadd.f32 %v269_v34, %v60_v27  ;;  %vm27_vm7 = vcmp.eq.s32.totalorder %v702_v30, %v688_v21 }
  0x99   :  { %v69_v37 = vmul.f32 1.442695, %v65_v33  ;;  %v62_v39 = vadd.f32 %v60_v27, %v52_v35 }
  0x9a   :  { %560 = vpow2.f32 %v284_v36  ;;  %v281_v40 = vsub.f32 0.0, %v277_v38 }
  0x9b   :  { %v66_v41 = vsub.f32 0.0, %v62_v39  ;;  %562 = vpow2.f32 %v69_v37  ;;  %v272_v42 = vpop.xlane.xlu1 %271 }
  0x9c   :  { %v55_v43 = vpop.xlane.xlu0 %54  ;;  %v286_v44 = vmul.f32 1.442695, %v281_v40  ;;  %v278_v46 = vadd.f32 %v272_v42, %v60_v27 }
  0x9d   :  { %v71_v45 = vmul.f32 1.442695, %v66_v41  ;;  %v63_v47 = vadd.f32 %v60_v27, %v55_v43 }
  0x9e   :  { %564 = vpow2.f32 %v286_v44  ;;  %v282_v48 = vsub.f32 0.0, %v278_v46 }
  0x9f   :  { %v67_v49 = vsub.f32 0.0, %v63_v47  ;;  %566 = vpow2.f32 %v71_v45  ;;  %v275_v50 = vpop.xlane.xlu1 %274 }
  0xa0   :  { %v59_v51 = vpop.xlane.xlu0 %58  ;;  %v288_v52 = vmul.f32 1.442695, %v282_v48  ;;  %v279_v54 = vadd.f32 %v275_v50, %v60_v27 }
  0xa1   :  { %v73_v53 = vmul.f32 1.442695, %v67_v49  ;;  %v64_v55 = vadd.f32 %v60_v27, %v59_v51 }
  0xa2   :  { %568 = vpow2.f32 %v288_v52  ;;  %v283_v56 = vsub.f32 0.0, %v279_v54 }
  0xa3   :  { %v68_v57 = vsub.f32 0.0, %v64_v55  ;;  %570 = vpow2.f32 %v73_v53 }
  0xa4   :  { %v561_v58 = vpop.eup %560  ;;  %v290_v59 = vmul.f32 1.442695, %v283_v56 }
  0xa5   :  { %v563_v60 = vpop.eup %562  ;;  %v292_v61 = vadd.f32 1.0, %v561_v58  ;;  %v75_v62 = vmul.f32 1.442695, %v68_v57 }
  0xa6   :  { %v77_v63 = vadd.f32 1.0, %v563_v60  ;;  %572 = vpow2.f32 %v290_v59 }
  0xa7   :  { %574 = vrcp.f32 %v292_v61 }
  0xa8   :  { %v565_v0 = vpop.eup %564  ;;  %576 = vpow2.f32 %v75_v62 }
  0xa9   :  { %v567_v3 = vpop.eup %566  ;;  %v293_v4 = vadd.f32 1.0, %v565_v0  ;;  %578 = vrcp.f32 %v77_v63 }
  0xaa   :  { %v78_v8 = vadd.f32 1.0, %v567_v3 }
  0xab   :  { %580 = vrcp.f32 %v293_v4 }
  0xac   :  { %v569_v11 = vpop.eup %568  ;;  %582 = vrcp.f32 %v78_v8 }
  0xad   :  { %v571_v12 = vpop.eup %570  ;;  %v294_v13 = vadd.f32 1.0, %v569_v11 }
  0xae   :  { %v79_v15 = vadd.f32 1.0, %v571_v12 }
  0xaf   :  { %584 = vrcp.f32 %v294_v13 }
  0xb0   :  { %v573_v19 = vpop.eup %572  ;;  %586 = vrcp.f32 %v79_v15 }
  0xb1   :  { %v295_v20 = vadd.f32 1.0, %v573_v19  ;;  %v690_v22 = vpop.eup %574 }
  0xb2   :  { %v577_v23 = vpop.eup %576  ;;  %v304_v32 = vmul.f32 %v690_v22, %v623_v1  ;;  %v308_v1 = vsel %vm24_vm4, %v690_v22, 0.0 }
  0xb3   :  { %588 = vrcp.f32 %v295_v20  ;;  %v697_v27 = vpop.eup %578  ;;  %v80_v28 = vadd.f32 1.0, %v577_v23  ;;  %v312_v43 = vsel %vm909_vm6, %v308_v1, 0.0  ;;  %v596_v20 = vmov 0  }
  0xb4   :  { %v89_v35 = vmul.f32 %v697_v27, %v628_v2  ;;  %v93_v40 = vsel %vm24_vm4, %v697_v27, 0.0 }
  0xb5   :  { %v699_v29 = vpop.eup %580  ;;  %590 = vrcp.f32 %v80_v28  ;;  %v98_v49 = vsel %vm909_vm6, %v93_v40, 0.0 }
  0xb6   :  { %v706_v31 = vpop.eup %582  ;;  %v305_v33 = vmul.f32 %v699_v29, %v635_v5  ;;  %v309_v34 = vsel %vm25_vm3, %v699_v29, 0.0 }
  0xb7   :  { %v90_v36 = vmul.f32 %v706_v31, %v640_v6  ;;  %v94_v2 = vsel %vm25_vm3, %v706_v31, 0.0  ;;  %v313_v6 = vsel %vm909_vm6, %v309_v34, 0.0 }
  0xb8   :  { %v549_v37 = vpack.c.bf16 %v305_v33, %v304_v32  ;;  %v99_v45 = vsel %vm909_vm6, %v94_v2, 0.0  ;;  %v314_v46 = vadd.f32 %v313_v6, %v312_v43 }
  0xb9   :  { %v726_v5 = vpop.eup %584  ;;  %v542_v38 = vpack.c.bf16 %v90_v36, %v89_v35 }
  0xba   :  { %v733_v39 = vpop.eup %586  ;;  %550 = vmatpush3.bf16.msra.mxu1 %v549_v37  ;;  %v310_v41 = vsel %vm26_vm5, %v726_v5, 0.0  ;;  %v306_v48 = vmul.f32 %v726_v5, %v647_v9  ;;  %v100_v9 = vadd.f32 %v99_v45, %v98_v49 }
  0xbb   :  { %543 = vmatpush3.bf16.msra.mxu0 %v542_v38  ;;  %551 = vmatprep.subr.bf16.mxu1 %v592_v25  ;;  %v95_v42 = vsel %vm26_vm5, %v733_v39, 0.0  ;;  %v315_v44 = vsel %vm909_vm6, %v310_v41, 0.0  ;;  %v91_v57 = vmul.f32 %v733_v39, %v652_v10 }
  0xbc   :  { %544 = vmatprep.subr.bf16.mxu0 %v592_v25  ;;  %v101_v51 = vsel %vm909_vm6, %v95_v42, 0.0  ;;  %v316_v52 = vadd.f32 %v315_v44, %v314_v46 }
  0xbd   :  { %v754_v47 = vpop.eup %588  ;;  %v102_v60 = vadd.f32 %v101_v51, %v100_v9 }
  0xbe   :  { %v307_v50 = vmul.f32 %v754_v47, %v663_v17  ;;  %v311_v25 = vsel %vm27_vm7, %v754_v47, 0.0 }
  0xbf   :  { %v317_v54 = vsel %vm908_vm9, %v311_v25, 0.0  ;;  %v772_v55 = vpop.eup %590 }
  0xc0   :  { %v552_v17 = vpack.c.bf16 %v307_v50, %v306_v48  ;;  %v318_v56 = vadd.f32 %v317_v54, %v316_v52  ;;  %v92_v58 = vmul.f32 %v772_v55, %v668_v18  ;;  %v96_v59 = vsel %vm27_vm7, %v772_v55, 0.0 }
  0xc1   :  { %v104_v61 = vsel %vm908_vm9, %v96_v59, 0.0 }
  0xc2   :  { %554 = vmatpush3.bf16.msk.msra.mxu1 %vm767_vm11, %v552_v17  ;;  %v319_v62 = vrot.slane %v318_v56, 4  ;;  %v545_v63 = vpack.c.bf16 %v92_v58, %v91_v57  ;;  %v105_v0 = vadd.f32 %v104_v61, %v102_v60 }
  0xc4   :  { %v320_v3 = vadd.f32 %v319_v62, %v318_v56  ;;  %547 = vmatpush3.bf16.msk.msra.mxu0 %vm767_vm11, %v545_v63  ;;  %v106_v10 = vrot.slane %v105_v0, 4 }
  0xc6   :  { %v321_v18 = vrot.slane %v320_v3, 2  ;;  %v107_v4 = vadd.f32 %v106_v10, %v105_v0 }
  0xc8   :  { %v322_v7 = vadd.f32 %v321_v18, %v320_v3  ;;  %v108_v8 = vrot.slane %v107_v4, 2 }
  0xca   :  { %v323_v11 = vrot.slane %v322_v7, 1  ;;  %v109_v12 = vadd.f32 %v108_v8, %v107_v4 }
  0xcc   :  { %v324_v13 = vadd.f32 %v323_v11, %v322_v7  ;;  %v110_v15 = vrot.slane %v109_v12, 1 }
  0xce   :  { %vm325_vm15 = vcmp.gt.f32.partialorder %v690_v22, %v324_v13  ;;  %vm326_vm1 = vcmp.gt.f32.partialorder %v699_v29, %v324_v13  ;;  %v111_v19 = vadd.f32 %v110_v15, %v109_v12  ;;  %vm327_vm4 = vcmp.gt.f32.partialorder %v726_v5, %v324_v13 }
  0xcf   :  { %v329_v23 = vsel %vm325_vm15, 1, %v596_v20  ;;  %vm333_vm7 = vcmp.eq.f32.partialorder %v690_v22, %v324_v13  ;;  %vm334_vm8 = vcmp.eq.f32.partialorder %v699_v29, %v324_v13  ;;  %vm335_vm10 = vcmp.eq.f32.partialorder %v726_v5, %v324_v13 }
  0xd0   :  { %vm112_vm11 = vcmp.gt.f32.partialorder %v697_v27, %v111_v19  ;;  %vm113_vm0 = vcmp.gt.f32.partialorder %v706_v31, %v111_v19  ;;  %vm114_vm2 = vcmp.gt.f32.partialorder %v733_v39, %v111_v19  ;;  %v330_v28 = vsel %vm326_vm1, 1, %v596_v20  ;;  %vm337_vm9 = vmand %vm333_vm7, %vm28_vm12 }
  0xd1   :  { %vm115_vm6 = vcmp.gt.f32.partialorder %v772_v55, %v111_v19  ;;  %v116_v32 = vsel %vm112_vm11, 1, %v596_v20  ;;  %v117_v33 = vsel %vm113_vm0, 1, %v596_v20  ;;  %v331_v22 = vsel %vm327_vm4, 1, %v596_v20  ;;  %vm338_vm15 = vmand %vm334_vm8, %vm29_vm13 }
  0xd2   :  { %v118_v29 = vsel %vm114_vm2, 1, %v596_v20  ;;  %vm120_vm5 = vcmp.eq.f32.partialorder %v697_v27, %v111_v19  ;;  %vm121_vm3 = vcmp.eq.f32.partialorder %v706_v31, %v111_v19  ;;  %vm122_vm1 = vcmp.eq.f32.partialorder %v733_v39, %v111_v19  ;;  %vm339_vm7 = vmand %vm335_vm10, %vm30_vm14 }
  0xd3   :  { %vm123_vm0 = vcmp.eq.f32.partialorder %v772_v55, %v111_v19  ;;  %vm124_vm4 = vmand %vm120_vm5, %vm28_vm12  ;;  %v341_v34 = vsel %vm337_vm9, 1, %v596_v20  ;;  %v342_v35 = vsel %vm338_vm15, 1, %v596_v20  ;;  %v343_v36 = vsel %vm339_vm7, 1, %v596_v20 }
  0xd4   :  { %vm125_vm2 = vmand %vm121_vm3, %vm29_vm13  ;;  %v128_v27 = vsel %vm124_vm4, 1, %v596_v20  ;;  %vm336_vm8 = vcmp.eq.f32.partialorder %v754_v47, %v324_v13  ;;  %v345_v31 = vadd.s32 %v341_v34, %v329_v23  ;;  %v346_v37 = vadd.s32 %v342_v35, %v330_v28 }
  0xd5   :  { %v119_v1 = vsel %vm115_vm6, 1, %v596_v20  ;;  %vm126_vm10 = vmand %vm122_vm1, %vm30_vm14  ;;  %v129_v5 = vsel %vm125_vm2, 1, %v596_v20  ;;  %v132_v38 = vadd.s32 %v128_v27, %v116_v32  ;;  %v347_v2 = vadd.s32 %v343_v36, %v331_v22 }
  0xd6   :  { %vm912_vm9 = vcmp.lt.s32.totalorder %v702_v30, %v688_v21  ;;  %v130_v6 = vsel %vm126_vm10, 1, %v596_v20  ;;  %v133_v39 = vadd.s32 %v129_v5, %v117_v33  ;;  %vm913_vm13 = vcmp.gt.f32.partialorder %v754_v47, %v324_v13 }
  0xd7   :  { %vm127_vm12 = vmand %vm123_vm0, %vm912_vm9  ;;  %v332_v40 = vsel %vm913_vm13, 1, %v596_v20  ;;  %vm914_vm3 = vcmask 236544   ;;  %v134_v43 = vadd.s32 %v130_v6, %v118_v29  ;;  %vm921_vm0 = vcmask 233472  }
  0xd8   :  { %v349_v41 = vsel %vm914_vm3, %v345_v31, 0  ;;  %v131_v42 = vsel %vm127_vm12, 1, %v596_v20  ;;  %vm915_vm6 = vmmov %vm914_vm3  ;;  %vm925_vm13 = vmmov 0  }
  0xd9   :  { %v136_v44 = vsel %vm915_vm6, %v132_v38, 0  ;;  %vm916_vm14 = vmmov %vm912_vm9  ;;  %v135_v46 = vadd.s32 %v131_v42, %v119_v1 }
  0xda   :  { %vm340_vm5 = vmand %vm336_vm8, %vm916_vm14 }
  0xdb   :  { %vm917_vm11 = vmmov %vm914_vm3  ;;  %v344_v49 = vsel %vm340_vm5, 1, %v596_v20  ;;  %v139_v53 = vsel %vm921_vm0, %v135_v46, 0 }
  0xdc   :  { %v350_v45 = vsel %vm917_vm11, %v346_v37, 0  ;;  %vm918_vm15 = vmmov %vm914_vm3  ;;  %v348_v25 = vadd.s32 %v344_v49, %v332_v40 }
  0xdd   :  { %v137_v48 = vsel %vm918_vm15, %v133_v39, 0  ;;  %vm919_vm1 = vmmov %vm914_vm3  ;;  %v353_v9 = vadd.s32 %v350_v45, %v349_v41 }
  0xde   :  { %v138_v50 = vsel %vm919_vm1, %v134_v43, 0  ;;  %v140_v51 = vadd.s32 %v137_v48, %v136_v44  ;;  %vm920_vm7 = vmmov %vm919_vm1 }
  0xdf   :  { %v351_v52 = vsel %vm920_vm7, %v347_v2, 0  ;;  %v141_v54 = vadd.s32 %v139_v53, %v138_v50  ;;  %vm922_vm4 = vmmov %vm921_vm0  ;;  %vm929_vm7 = vcmask 261120  }
  0xe0   :  { %v352_v21 = vsel %vm922_vm4, %v348_v25, 0  ;;  %vm923_vm10 = vmmov %vm919_vm1 }
  0xe1   :  { %v354_v30 = vadd.s32 %v352_v21, %v351_v52  ;;  %v142_v47 = vadd.s32 %v141_v54, %v140_v51  ;;  %vm924_vm12 = vmmov %vm919_vm1 }
  0xe2   :  { %vm926_vm6 = vmmov %vm919_vm1 }
  0xe3   :  { %v355_v55 = vadd.s32 %v354_v30, %v353_v9  ;;  %v143_v17 = vrot.slane %v142_v47, 4  ;;  %vm927_vm5 = vmmov %vm919_vm1 }
  0xe4   :  { %vm928_vm15 = vmmov %vm919_vm1 }
  0xe5   :  { %v356_v56 = vrot.slane %v355_v55, 4  ;;  %v144_v57 = vadd.s32 %v143_v17, %v142_v47  ;;  %vm930_vm0 = vmmov %vm929_vm7 }
  0xe6   :  { %vm931_vm4 = vmmov %vm930_vm0 }
  0xe7   :  { %v357_v58 = vadd.s32 %v356_v56, %v355_v55  ;;  %v145_v59 = vrot.slane %v144_v57, 2 }
  0xe9   :  { %v358_v60 = vrot.slane %v357_v58, 2  ;;  %v146_v61 = vadd.s32 %v145_v59, %v144_v57 }
  0xeb   :  { %v359_v62 = vadd.s32 %v358_v60, %v357_v58  ;;  %v147_v63 = vrot.slane %v146_v61, 1 }
  0xed   :  { %v360_v0 = vrot.slane %v359_v62, 1  ;;  %v148_v3 = vadd.s32 %v147_v63, %v146_v61 }
  0xef   :  { %v361_v10 = vadd.s32 %v360_v0, %v359_v62  ;;  %vm149_vm2 = vcmp.eq.s32.totalorder %v148_v3, %v683_v14  ;;  %vm150_vm9 = vcmp.eq.s32.totalorder %v148_v3, %v686_v16  ;;  %vm151_vm14 = vcmp.eq.s32.totalorder %v148_v3, %v693_v24 }
  0xf0   :  { %v472_v18 = vsel %vm149_vm2, 1.0, %v594_v26  ;;  %v473_v7 = vsel %vm150_vm9, 1.0, %v594_v26  ;;  %vm932_vm2 = vmmov %vm930_vm0 }
  0xf1   :  { %vm362_vm8 = vcmp.eq.s32.totalorder %v361_v10, %v683_v14  ;;  %516 = vmatmul.mubr.msk.f32.vlgmr.msra.gmra.mrb[0].mxu0 %vm923_vm10, %v472_v18  ;;  %vm363_vm3 = vcmp.eq.s32.totalorder %v361_v10, %v686_v16  ;;  %vm364_vm11 = vcmp.eq.s32.totalorder %v361_v10, %v693_v24  ;;  %v474_v16 = vsel %vm151_vm14, 1.0, %v594_v26 }
  0xf2   :  { %v483_v4 = vsel %vm362_vm8, 1.0, %v594_v26  ;;  %518 = vmatprep.mubr.msk.f32.mxu0 %vm925_vm13, %v594_v26  ;;  %v484_v14 = vsel %vm363_vm3, 1.0, %v594_v26  ;;  %v485_v8 = vsel %vm364_vm11, 1.0, %v594_v26  ;;  %vm253_vm8 = vcmask 254976  }
  0xf3   :  { %533 = vmatmul.mubr.msk.f32.vlgmr.msra.gmra.mrb[0].mxu1 %vm924_vm12, %v483_v4 }
  0xf4   :  { %535 = vmatprep.mubr.msk.f32.mxu1 %vm925_vm13, %v594_v26 }
  0xf5   :  { %519 = vmatmul.mubr.msk.f32.gmra.mrb[2].mxu0 %vm926_vm6, %v473_v7 }
  0xf6   :  { %521 = vmatprep.mubr.msk.f32.mxu0 %vm925_vm13, %v594_v26 }
  0xf7   :  { %536 = vmatmul.mubr.msk.f32.gmra.mrb[2].mxu1 %vm927_vm5, %v484_v14 }
  0xf8   :  { %538 = vmatprep.mubr.msk.f32.mxu1 %vm925_vm13, %v594_v26 }
  0xf9   :  { %522 = vmatmul.mubr.msk.f32.gmra.mrb[4].mxu0 %vm928_vm15, %v474_v16 }
  0xfb   :  { %539 = vmatmul.mubr.msk.f32.gmra.mrb[4].mxu1 %vm919_vm1, %v485_v8 }
 0x1c4   :  { %v237_v11 = vpop.f32.mrb[0].mxu0 }
 0x1c5   :  { %251 = vst.msk [vmem:[%s904_s3] sm:$0xff] %vm929_vm7, %v237_v11  ;;  %v517_v13 = vpop.f32.mrb[1].mxu0 }
 0x1c6   :  { %v449_v12 = vpop.f32.mrb[0].mxu1 }
 0x1c7   :  { %490 = vst.msk [vmem:[%s904_s3 + $0x18] sm:$0xff] %vm930_vm0, %v449_v12  ;;  %v534_v24 = vpop.f32.mrb[1].mxu1 }
 0x1c8   :  { %v242_v15 = vpop.f32.mrb[2].mxu0 }
 0x1c9   :  { %252 = vst.msk [vmem:[%s904_s3 + $0x8] sm:$0xff] %vm931_vm4, %v242_v15  ;;  %v520_v19 = vpop.f32.mrb[3].mxu0 }
 0x1ca   :  { %v454_v26 = vpop.f32.mrb[2].mxu1 }
 0x1cb   :  { %491 = vst.msk [vmem:[%s904_s3 + $0x20] sm:$0xff] %vm932_vm2, %v454_v26  ;;  %v537_v20 = vpop.f32.mrb[3].mxu1 }
 0x1cc   :  { %v247_v23 = vpop.f32.mrb[4].mxu0 }
 0x1cd   :  { %254 = vst.msk [vmem:[%s904_s3 + $0x10] sm:$0x3] %vm253_vm8, %v247_v23  ;;  %v523_v32 = vpop.f32.mrb[5].mxu0 }
 0x1ce   :  { %v459_v28 = vpop.f32.mrb[4].mxu1 }
 0x1cf   :  { %492 = vst.msk [vmem:[%s904_s3 + $0x28] sm:$0x3] %vm253_vm8, %v459_v28  ;;  %v540_v33 = vpop.f32.mrb[5].mxu1 }

</bundles_post_ra>
